<compile_context>
chip_gen: v7x
topology: tpu7x:2x2x1
jax: 0.10.0
libtpu: 0.0.40
codegen_flags: <defaults>
</compile_context>

<pallas_src>
import functools

import jax
import jax.numpy as jnp
from jax.experimental import pallas as pl
from jax.experimental.pallas import tpu as pltpu


def _ealstm_kernel(i_ref, w_hh_ref, xp_ref, h_out_ref, c_out_ref,
                   h_scr, c_scr, *, hidden, chunk, unroll):
    """One grid step = one (batch_tile, time_chunk).

    i_ref    : (Bb, H)       static input gate (precomputed)
    w_hh_ref : (H, 3H)       recurrent weights (resident across the grid)
    xp_ref   : (Tc, Bb, 3H)  precomputed x_d @ W_ih + bias for this chunk
    h_out/c_out : (Tc, Bb, H) per-timestep outputs for this chunk
    h_scr/c_scr : (Bb, H)    f32 recurrent carry across time chunks
    """
    t = pl.program_id(1)
    H = hidden

    @pl.when(t == 0)
    def _():
        h_scr[...] = jnp.zeros_like(h_scr)
        c_scr[...] = jnp.zeros_like(c_scr)

    # Hoist loads of loop-invariant operands out of the timestep loop.
    w_hh = w_hh_ref[...].astype(jnp.float32)
    i_gate = i_ref[...].astype(jnp.float32)

    def step(s, carry):
        h, c = carry
        gates = (jnp.dot(h, w_hh, preferred_element_type=jnp.float32)
                 + xp_ref[s].astype(jnp.float32))
        f = gates[:, 0 * H:1 * H]
        o = gates[:, 1 * H:2 * H]
        g = gates[:, 2 * H:3 * H]
        c1 = jax.nn.sigmoid(f) * c + i_gate * jnp.tanh(g)
        h1 = jax.nn.sigmoid(o) * jnp.tanh(c1)
        h_out_ref[s] = h1.astype(h_out_ref.dtype)
        c_out_ref[s] = c1.astype(c_out_ref.dtype)
        return h1, c1

    h0 = h_scr[...]
    c0 = c_scr[...]
    h_f, c_f = jax.lax.fori_loop(0, chunk, step, (h0, c0), unroll=unroll)
    h_scr[...] = h_f
    c_scr[...] = c_f


def _pick_time_chunk(requested, T, Bb, H, itemsize):
    """Largest time-chunk <= requested that keeps pipelined VMEM under budget."""
    budget = 48 << 20  # conservative: v7x has only 64 MiB VMEM per TC

    def vmem_bytes(tc):
        xblk = tc * Bb * 3 * H * itemsize * 2          # x-proj chunk, 2 buffers
        oblk = 2 * tc * Bb * H * itemsize * 2          # h/c output chunks, 2 buffers
        wblk = (H * 3 * H + Bb * H) * itemsize * 2     # W_hh + static gate
        scr = 2 * Bb * H * 4                           # f32 carries
        return xblk + oblk + wblk + scr

    tc = max(1, min(requested, T))
    while tc > 1 and vmem_bytes(tc) > budget:
        tc = max(1, tc // 2)
    return tc, vmem_bytes(tc)


@functools.partial(jax.jit, static_argnames=("time_chunk",))
def ealstm_forward(x_d, x_s, w_ih, w_hh, w_sh, bias, bias_s, *,
                   time_chunk=32):
    """EA-LSTM forward. x_d: [B, T, D_dyn], x_s: [B, D_stat].

    Returns (h_n, c_n), each [B, T, H] (batch_first=True semantics).
    """
    B, T, _ = x_d.shape
    H = w_hh.shape[0]

    # --- hoisted out of the serial loop: one big matmul each --------------
    # static input gate  i = sigmoid(x_s @ W_sh + b_s)             -> [B, H]
    i_gate = jax.nn.sigmoid(
        jnp.dot(x_s, w_sh, preferred_element_type=jnp.float32)
        + bias_s[None, :]).astype(x_d.dtype)
    # input projection for all timesteps, time-first               -> [T, B, 3H]
    x_proj = (jnp.einsum("btd,dg->tbg", x_d, w_ih,
                         preferred_element_type=jnp.float32)
              + bias[None, None, :]).astype(x_d.dtype)

    # --- batch tiling (gives v7x's 2 TensorCores independent work) --------
    # Batch tile must equal B or be a multiple of 8 (sublane constraint).
    if B >= 16 and B % 16 == 0:
        Bb = B // 2
    else:
        Bb = B
    nb = B // Bb

    # --- time chunking, VMEM-budget aware ----------------------------------
    Tc, vmem_est = _pick_time_chunk(time_chunk, T, Bb, H, x_d.dtype.itemsize)
    T_pad = ((T + Tc - 1) // Tc) * Tc
    if T_pad != T:
        # padded trailing steps run harmlessly after all valid ones
        x_proj = jnp.pad(x_proj, ((0, T_pad - T), (0, 0), (0, 0)))
    nt = T_pad // Tc
    # Full unroll for short chunks (LLO scheduling visibility); bounded
    # partial unroll otherwise to keep code size in check.
    unroll = True if Tc <= 32 else 8

    kernel = functools.partial(_ealstm_kernel, hidden=H, chunk=Tc,
                               unroll=unroll)

    vmem_limit = min(max(int(vmem_est * 1.5), 32 << 20), 100 << 20)

    h_seq, c_seq = pl.pallas_call(
        kernel,
        out_shape=(jax.ShapeDtypeStruct((T_pad, B, H), x_d.dtype),
                   jax.ShapeDtypeStruct((T_pad, B, H), x_d.dtype)),
        grid_spec=pltpu.PrefetchScalarGridSpec(
            num_scalar_prefetch=0,
            grid=(nb, nt),
            in_specs=[
                pl.BlockSpec((Bb, H), lambda b, t: (b, 0)),             # i gate
                pl.BlockSpec((H, 3 * H), lambda b, t: (0, 0)),          # W_hh
                pl.BlockSpec((Tc, Bb, 3 * H), lambda b, t: (t, b, 0)),  # x proj chunk
            ],
            out_specs=(pl.BlockSpec((Tc, Bb, H), lambda b, t: (t, b, 0)),
                       pl.BlockSpec((Tc, Bb, H), lambda b, t: (t, b, 0))),
            scratch_shapes=[pltpu.VMEM((Bb, H), jnp.float32),   # h carry
                            pltpu.VMEM((Bb, H), jnp.float32)],  # c carry
        ),
        compiler_params=pltpu.CompilerParams(
            dimension_semantics=("parallel", "arbitrary"),
            vmem_limit_bytes=vmem_limit),
    )(i_gate, w_hh, x_proj)

    # TODO(synk): outputs are produced time-first; the final [T,B,H]->[B,T,H]
    # transpose stays in XLA (cheap) rather than as a dynamic-sublane store
    # inside the kernel.
    h_n = jnp.transpose(h_seq[:T], (1, 0, 2))
    c_n = jnp.transpose(c_seq[:T], (1, 0, 2))
    return h_n, c_n


def _orthogonal(key, shape):
    """Deterministic orthogonal init (PyTorch-style) for a 2-D shape."""
    rows, cols = shape
    a = jax.random.normal(key, (max(rows, cols), min(rows, cols)),
                          dtype=jnp.float32)
    q, r = jnp.linalg.qr(a)
    q = q * jnp.sign(jnp.diag(r))
    if rows < cols:
        q = q.T
    return q[:rows, :cols].astype(jnp.float32)


def _ealstm_ref(x_d, x_s, w_ih, w_hh, w_sh, bias, bias_s):
    """Pure-JAX reference matching the PyTorch forward exactly."""
    B, T, _ = x_d.shape
    H = w_hh.shape[0]
    i = jax.nn.sigmoid(x_s @ w_sh + bias_s)
    h = jnp.zeros((B, H), jnp.float32)
    c = jnp.zeros((B, H), jnp.float32)
    hs, cs = [], []
    for t in range(T):
        gates = h @ w_hh + bias + x_d[:, t, :] @ w_ih
        f, o, g = gates[:, :H], gates[:, H:2 * H], gates[:, 2 * H:]
        c = jax.nn.sigmoid(f) * c + i * jnp.tanh(g)
        h = jax.nn.sigmoid(o) * jnp.tanh(c)
        hs.append(h)
        cs.append(c)
    return jnp.stack(hs, 1), jnp.stack(cs, 1)


if __name__ == "__main__":
    # Small shapes consistent with the module's forward.
    batch = 2
    seq = 8
    input_size_dyn = 4
    input_size_stat = 5
    hidden_size = 32
    initial_forget_bias = 0

    key = jax.random.PRNGKey(0)
    k_ih, k_sh, k_xd, k_xs = jax.random.split(key, 4)

    # Deterministic parameter init mirroring EALSTM.reset_parameters().
    weight_ih = _orthogonal(k_ih, (input_size_dyn, 3 * hidden_size))
    weight_sh = _orthogonal(k_sh, (input_size_stat, hidden_size))
    weight_hh = jnp.tile(jnp.eye(hidden_size, dtype=jnp.float32), (1, 3))
    bias = jnp.zeros((3 * hidden_size,), jnp.float32)
    if initial_forget_bias != 0:
        bias = bias.at[:hidden_size].set(float(initial_forget_bias))
    bias_s = jnp.zeros((hidden_size,), jnp.float32)

    # Inputs: x_d [batch, seq, dyn] (batch_first=True), x_s [batch, stat].
    x_d = jax.random.normal(k_xd, (batch, seq, input_size_dyn),
                            dtype=jnp.float32)
    x_s = jax.random.normal(k_xs, (batch, input_size_stat),
                            dtype=jnp.float32)

    h_n, c_n = ealstm_forward(x_d, x_s, weight_ih, weight_hh, weight_sh,
                              bias, bias_s)
    jax.block_until_ready((h_n, c_n))

    h_ref, c_ref = _ealstm_ref(x_d, x_s, weight_ih, weight_hh, weight_sh,
                               bias, bias_s)
    assert h_n.shape == (batch, seq, hidden_size)
    assert c_n.shape == (batch, seq, hidden_size)
    assert jnp.allclose(h_n, h_ref, rtol=1e-3, atol=1e-3)
    assert jnp.allclose(c_n, c_ref, rtol=1e-3, atol=1e-3)

    print("KERNEL_OK")
</pallas_src>

<mosaic_0001>
module attributes {stable_mosaic.version = 11 : i64} {
  func.func @_ealstm_kernel(%arg0: i32, %arg1: i32, %arg2: memref<2x32xf32, #tpu.memory_space<vmem>>, %arg3: memref<32x96xf32, #tpu.memory_space<vmem>>, %arg4: memref<8x2x96xf32, #tpu.memory_space<vmem>>, %arg5: memref<8x2x32xf32, #tpu.memory_space<vmem>>, %arg6: memref<8x2x32xf32, #tpu.memory_space<vmem>>, %arg7: memref<2x32xf32, #tpu.memory_space<vmem>>, %arg8: memref<2x32xf32, #tpu.memory_space<vmem>>) attributes {dimension_semantics = [#tpu.dimension_semantics<parallel>, #tpu.dimension_semantics<arbitrary>], iteration_bounds = array<i64: 1, 1>, scalar_prefetch = 0 : i64, scratch_operands = 2 : i64, tpu.core_type = #tpu.core_type<tc>, window_params = [{transform_indices = @transform_0, window_bounds = array<i64: 2, 32>}, {pipeline_mode = #tpu.pipeline_mode<synchronous>, transform_indices = @transform_1, window_bounds = array<i64: 32, 96>}, {transform_indices = @transform_2, window_bounds = array<i64: 8, 2, 96>}, {transform_indices = @transform_3, window_bounds = array<i64: 8, 2, 32>}, {transform_indices = @transform_4, window_bounds = array<i64: 8, 2, 32>}]} {
    %c0_i32 = arith.constant 0 : i32
    %0 = arith.cmpi eq, %arg1, %c0_i32 : i32
    %1 = arith.extui %0 : i1 to i32
    %c0_i32_0 = arith.constant 0 : i32
    %2 = arith.cmpi ne, %1, %c0_i32_0 : i32
    scf.if %2 {
      %cst_84 = arith.constant 0.000000e+00 : f32
      %265 = vector.broadcast %cst_84 : f32 to vector<2x32xf32>
      %c0_85 = arith.constant 0 : index
      %c0_86 = arith.constant 0 : index
      %266 = vector.load %arg7[%c0_85, %c0_86] : memref<2x32xf32, #tpu.memory_space<vmem>>, vector<2x32xf32>
      tpu.vector_store %arg7[%c0_85, %c0_86], %265 {strides = array<i32>} : memref<2x32xf32, #tpu.memory_space<vmem>>, vector<2x32xf32>,
      %cst_87 = arith.constant 0.000000e+00 : f32
      %267 = vector.broadcast %cst_87 : f32 to vector<2x32xf32>
      %c0_88 = arith.constant 0 : index
      %c0_89 = arith.constant 0 : index
      %268 = vector.load %arg8[%c0_88, %c0_89] : memref<2x32xf32, #tpu.memory_space<vmem>>, vector<2x32xf32>
      tpu.vector_store %arg8[%c0_88, %c0_89], %267 {strides = array<i32>} : memref<2x32xf32, #tpu.memory_space<vmem>>, vector<2x32xf32>,
    } else {
    }
    %c0 = arith.constant 0 : index
    %c0_1 = arith.constant 0 : index
    %3 = vector.load %arg3[%c0, %c0_1] : memref<32x96xf32, #tpu.memory_space<vmem>>, vector<32x96xf32>
    %c0_2 = arith.constant 0 : index
    %c0_3 = arith.constant 0 : index
    %4 = vector.load %arg2[%c0_2, %c0_3] : memref<2x32xf32, #tpu.memory_space<vmem>>, vector<2x32xf32>
    %c0_4 = arith.constant 0 : index
    %c0_5 = arith.constant 0 : index
    %5 = vector.load %arg7[%c0_4, %c0_5] : memref<2x32xf32, #tpu.memory_space<vmem>>, vector<2x32xf32>
    %c0_6 = arith.constant 0 : index
    %c0_7 = arith.constant 0 : index
    %6 = vector.load %arg8[%c0_6, %c0_7] : memref<2x32xf32, #tpu.memory_space<vmem>>, vector<2x32xf32>
    %c0_i32_8 = arith.constant 0 : i32
    %cst = arith.constant dense<0.000000e+00> : vector<2x96xf32>
    %7 = tpu.matmul %5, %3, %cst {dimension_numbers = #tpu.dot_dimension_numbers<[1], [0], [0], [1], [0, 0, 1, 1], [], []>} : vector<2x32xf32>, vector<32x96xf32>, vector<2x96xf32> -> vector<2x96xf32>
    %8 = arith.index_cast %c0_i32_8 : i32 to index
    %c0_9 = arith.constant 0 : index
    %c0_10 = arith.constant 0 : index
    %9 = vector.load %arg4[%8, %c0_9, %c0_10] : memref<8x2x96xf32, #tpu.memory_space<vmem>>, vector<1x2x96xf32>
    %10 = vector.shape_cast %9 : vector<1x2x96xf32> to vector<2x96xf32>
    %11 = arith.addf %7, %10 : vector<2x96xf32>
    %12 = vector.extract_strided_slice %11 {offsets = [0, 0], sizes = [2, 32], strides = [1, 1]} : vector<2x96xf32> to vector<2x32xf32>
    %13 = vector.extract_strided_slice %11 {offsets = [0, 32], sizes = [2, 32], strides = [1, 1]} : vector<2x96xf32> to vector<2x32xf32>
    %14 = vector.extract_strided_slice %11 {offsets = [0, 64], sizes = [2, 32], strides = [1, 1]} : vector<2x96xf32> to vector<2x32xf32>
    %15 = arith.negf %12 : vector<2x32xf32>
    %16 = math.exp %15 : vector<2x32xf32>
    %cst_11 = arith.constant 1.000000e+00 : f32
    %17 = vector.broadcast %cst_11 : f32 to vector<2x32xf32>
    %18 = arith.addf %17, %16 : vector<2x32xf32>
    %19 = arith.divf %17, %18 : vector<2x32xf32>
    %20 = arith.mulf %19, %6 : vector<2x32xf32>
    %21 = math.tanh %14 : vector<2x32xf32>
    %22 = arith.mulf %4, %21 : vector<2x32xf32>
    %23 = arith.addf %20, %22 : vector<2x32xf32>
    %24 = arith.negf %13 : vector<2x32xf32>
    %25 = math.exp %24 : vector<2x32xf32>
    %cst_12 = arith.constant 1.000000e+00 : f32
    %26 = vector.broadcast %cst_12 : f32 to vector<2x32xf32>
    %27 = arith.addf %26, %25 : vector<2x32xf32>
    %28 = arith.divf %26, %27 : vector<2x32xf32>
    %29 = math.tanh %23 : vector<2x32xf32>
    %30 = arith.mulf %28, %29 : vector<2x32xf32>
    %31 = arith.index_cast %c0_i32_8 : i32 to index
    %c0_13 = arith.constant 0 : index
    %c0_14 = arith.constant 0 : index
    %32 = vector.load %arg5[%31, %c0_13, %c0_14] : memref<8x2x32xf32, #tpu.memory_space<vmem>>, vector<1x2x32xf32>
    %33 = vector.shape_cast %32 : vector<1x2x32xf32> to vector<2x32xf32>
    %34 = vector.shape_cast %30 : vector<2x32xf32> to vector<1x2x32xf32>
    tpu.vector_store %arg5[%31, %c0_13, %c0_14], %34 {strides = array<i32>} : memref<8x2x32xf32, #tpu.memory_space<vmem>>, vector<1x2x32xf32>,
    %35 = arith.index_cast %c0_i32_8 : i32 to index
    %c0_15 = arith.constant 0 : index
    %c0_16 = arith.constant 0 : index
    %36 = vector.load %arg6[%35, %c0_15, %c0_16] : memref<8x2x32xf32, #tpu.memory_space<vmem>>, vector<1x2x32xf32>
    %37 = vector.shape_cast %36 : vector<1x2x32xf32> to vector<2x32xf32>
    %38 = vector.shape_cast %23 : vector<2x32xf32> to vector<1x2x32xf32>
    tpu.vector_store %arg6[%35, %c0_15, %c0_16], %38 {strides = array<i32>} : memref<8x2x32xf32, #tpu.memory_space<vmem>>, vector<1x2x32xf32>,
    %c1_i32 = arith.constant 1 : i32
    %cst_17 = arith.constant dense<0.000000e+00> : vector<2x96xf32>
    %39 = tpu.matmul %30, %3, %cst_17 {dimension_numbers = #tpu.dot_dimension_numbers<[1], [0], [0], [1], [0, 0, 1, 1], [], []>} : vector<2x32xf32>, vector<32x96xf32>, vector<2x96xf32> -> vector<2x96xf32>
    %40 = arith.index_cast %c1_i32 : i32 to index
    %c0_18 = arith.constant 0 : index
    %c0_19 = arith.constant 0 : index
    %41 = vector.load %arg4[%40, %c0_18, %c0_19] : memref<8x2x96xf32, #tpu.memory_space<vmem>>, vector<1x2x96xf32>
    %42 = vector.shape_cast %41 : vector<1x2x96xf32> to vector<2x96xf32>
    %43 = arith.addf %39, %42 : vector<2x96xf32>
    %44 = vector.extract_strided_slice %43 {offsets = [0, 0], sizes = [2, 32], strides = [1, 1]} : vector<2x96xf32> to vector<2x32xf32>
    %45 = vector.extract_strided_slice %43 {offsets = [0, 32], sizes = [2, 32], strides = [1, 1]} : vector<2x96xf32> to vector<2x32xf32>
    %46 = vector.extract_strided_slice %43 {offsets = [0, 64], sizes = [2, 32], strides = [1, 1]} : vector<2x96xf32> to vector<2x32xf32>
    %47 = arith.negf %44 : vector<2x32xf32>
    %48 = math.exp %47 : vector<2x32xf32>
    %cst_20 = arith.constant 1.000000e+00 : f32
    %49 = vector.broadcast %cst_20 : f32 to vector<2x32xf32>
    %50 = arith.addf %49, %48 : vector<2x32xf32>
    %51 = arith.divf %49, %50 : vector<2x32xf32>
    %52 = arith.mulf %51, %23 : vector<2x32xf32>
    %53 = math.tanh %46 : vector<2x32xf32>
    %54 = arith.mulf %4, %53 : vector<2x32xf32>
    %55 = arith.addf %52, %54 : vector<2x32xf32>
    %56 = arith.negf %45 : vector<2x32xf32>
    %57 = math.exp %56 : vector<2x32xf32>
    %cst_21 = arith.constant 1.000000e+00 : f32
    %58 = vector.broadcast %cst_21 : f32 to vector<2x32xf32>
    %59 = arith.addf %58, %57 : vector<2x32xf32>
    %60 = arith.divf %58, %59 : vector<2x32xf32>
    %61 = math.tanh %55 : vector<2x32xf32>
    %62 = arith.mulf %60, %61 : vector<2x32xf32>
    %63 = arith.index_cast %c1_i32 : i32 to index
    %c0_22 = arith.constant 0 : index
    %c0_23 = arith.constant 0 : index
    %64 = vector.load %arg5[%63, %c0_22, %c0_23] : memref<8x2x32xf32, #tpu.memory_space<vmem>>, vector<1x2x32xf32>
    %65 = vector.shape_cast %64 : vector<1x2x32xf32> to vector<2x32xf32>
    %66 = vector.shape_cast %62 : vector<2x32xf32> to vector<1x2x32xf32>
    tpu.vector_store %arg5[%63, %c0_22, %c0_23], %66 {strides = array<i32>} : memref<8x2x32xf32, #tpu.memory_space<vmem>>, vector<1x2x32xf32>,
    %67 = arith.index_cast %c1_i32 : i32 to index
    %c0_24 = arith.constant 0 : index
    %c0_25 = arith.constant 0 : index
    %68 = vector.load %arg6[%67, %c0_24, %c0_25] : memref<8x2x32xf32, #tpu.memory_space<vmem>>, vector<1x2x32xf32>
    %69 = vector.shape_cast %68 : vector<1x2x32xf32> to vector<2x32xf32>
    %70 = vector.shape_cast %55 : vector<2x32xf32> to vector<1x2x32xf32>
    tpu.vector_store %arg6[%67, %c0_24, %c0_25], %70 {strides = array<i32>} : memref<8x2x32xf32, #tpu.memory_space<vmem>>, vector<1x2x32xf32>,
    %c2_i32 = arith.constant 2 : i32
    %cst_26 = arith.constant dense<0.000000e+00> : vector<2x96xf32>
    %71 = tpu.matmul %62, %3, %cst_26 {dimension_numbers = #tpu.dot_dimension_numbers<[1], [0], [0], [1], [0, 0, 1, 1], [], []>} : vector<2x32xf32>, vector<32x96xf32>, vector<2x96xf32> -> vector<2x96xf32>
    %72 = arith.index_cast %c2_i32 : i32 to index
    %c0_27 = arith.constant 0 : index
    %c0_28 = arith.constant 0 : index
    %73 = vector.load %arg4[%72, %c0_27, %c0_28] : memref<8x2x96xf32, #tpu.memory_space<vmem>>, vector<1x2x96xf32>
    %74 = vector.shape_cast %73 : vector<1x2x96xf32> to vector<2x96xf32>
    %75 = arith.addf %71, %74 : vector<2x96xf32>
    %76 = vector.extract_strided_slice %75 {offsets = [0, 0], sizes = [2, 32], strides = [1, 1]} : vector<2x96xf32> to vector<2x32xf32>
    %77 = vector.extract_strided_slice %75 {offsets = [0, 32], sizes = [2, 32], strides = [1, 1]} : vector<2x96xf32> to vector<2x32xf32>
    %78 = vector.extract_strided_slice %75 {offsets = [0, 64], sizes = [2, 32], strides = [1, 1]} : vector<2x96xf32> to vector<2x32xf32>
    %79 = arith.negf %76 : vector<2x32xf32>
    %80 = math.exp %79 : vector<2x32xf32>
    %cst_29 = arith.constant 1.000000e+00 : f32
    %81 = vector.broadcast %cst_29 : f32 to vector<2x32xf32>
    %82 = arith.addf %81, %80 : vector<2x32xf32>
    %83 = arith.divf %81, %82 : vector<2x32xf32>
    %84 = arith.mulf %83, %55 : vector<2x32xf32>
    %85 = math.tanh %78 : vector<2x32xf32>
    %86 = arith.mulf %4, %85 : vector<2x32xf32>
    %87 = arith.addf %84, %86 : vector<2x32xf32>
    %88 = arith.negf %77 : vector<2x32xf32>
    %89 = math.exp %88 : vector<2x32xf32>
    %cst_30 = arith.constant 1.000000e+00 : f32
    %90 = vector.broadcast %cst_30 : f32 to vector<2x32xf32>
    %91 = arith.addf %90, %89 : vector<2x32xf32>
    %92 = arith.divf %90, %91 : vector<2x32xf32>
    %93 = math.tanh %87 : vector<2x32xf32>
    %94 = arith.mulf %92, %93 : vector<2x32xf32>
    %95 = arith.index_cast %c2_i32 : i32 to index
    %c0_31 = arith.constant 0 : index
    %c0_32 = arith.constant 0 : index
    %96 = vector.load %arg5[%95, %c0_31, %c0_32] : memref<8x2x32xf32, #tpu.memory_space<vmem>>, vector<1x2x32xf32>
    %97 = vector.shape_cast %96 : vector<1x2x32xf32> to vector<2x32xf32>
    %98 = vector.shape_cast %94 : vector<2x32xf32> to vector<1x2x32xf32>
    tpu.vector_store %arg5[%95, %c0_31, %c0_32], %98 {strides = array<i32>} : memref<8x2x32xf32, #tpu.memory_space<vmem>>, vector<1x2x32xf32>,
    %99 = arith.index_cast %c2_i32 : i32 to index
    %c0_33 = arith.constant 0 : index
    %c0_34 = arith.constant 0 : index
    %100 = vector.load %arg6[%99, %c0_33, %c0_34] : memref<8x2x32xf32, #tpu.memory_space<vmem>>, vector<1x2x32xf32>
    %101 = vector.shape_cast %100 : vector<1x2x32xf32> to vector<2x32xf32>
    %102 = vector.shape_cast %87 : vector<2x32xf32> to vector<1x2x32xf32>
    tpu.vector_store %arg6[%99, %c0_33, %c0_34], %102 {strides = array<i32>} : memref<8x2x32xf32, #tpu.memory_space<vmem>>, vector<1x2x32xf32>,
    %c3_i32 = arith.constant 3 : i32
    %cst_35 = arith.constant dense<0.000000e+00> : vector<2x96xf32>
    %103 = tpu.matmul %94, %3, %cst_35 {dimension_numbers = #tpu.dot_dimension_numbers<[1], [0], [0], [1], [0, 0, 1, 1], [], []>} : vector<2x32xf32>, vector<32x96xf32>, vector<2x96xf32> -> vector<2x96xf32>
    %104 = arith.index_cast %c3_i32 : i32 to index
    %c0_36 = arith.constant 0 : index
    %c0_37 = arith.constant 0 : index
    %105 = vector.load %arg4[%104, %c0_36, %c0_37] : memref<8x2x96xf32, #tpu.memory_space<vmem>>, vector<1x2x96xf32>
    %106 = vector.shape_cast %105 : vector<1x2x96xf32> to vector<2x96xf32>
    %107 = arith.addf %103, %106 : vector<2x96xf32>
    %108 = vector.extract_strided_slice %107 {offsets = [0, 0], sizes = [2, 32], strides = [1, 1]} : vector<2x96xf32> to vector<2x32xf32>
    %109 = vector.extract_strided_slice %107 {offsets = [0, 32], sizes = [2, 32], strides = [1, 1]} : vector<2x96xf32> to vector<2x32xf32>
    %110 = vector.extract_strided_slice %107 {offsets = [0, 64], sizes = [2, 32], strides = [1, 1]} : vector<2x96xf32> to vector<2x32xf32>
    %111 = arith.negf %108 : vector<2x32xf32>
    %112 = math.exp %111 : vector<2x32xf32>
    %cst_38 = arith.constant 1.000000e+00 : f32
    %113 = vector.broadcast %cst_38 : f32 to vector<2x32xf32>
    %114 = arith.addf %113, %112 : vector<2x32xf32>
    %115 = arith.divf %113, %114 : vector<2x32xf32>
    %116 = arith.mulf %115, %87 : vector<2x32xf32>
    %117 = math.tanh %110 : vector<2x32xf32>
    %118 = arith.mulf %4, %117 : vector<2x32xf32>
    %119 = arith.addf %116, %118 : vector<2x32xf32>
    %120 = arith.negf %109 : vector<2x32xf32>
    %121 = math.exp %120 : vector<2x32xf32>
    %cst_39 = arith.constant 1.000000e+00 : f32
    %122 = vector.broadcast %cst_39 : f32 to vector<2x32xf32>
    %123 = arith.addf %122, %121 : vector<2x32xf32>
    %124 = arith.divf %122, %123 : vector<2x32xf32>
    %125 = math.tanh %119 : vector<2x32xf32>
    %126 = arith.mulf %124, %125 : vector<2x32xf32>
    %127 = arith.index_cast %c3_i32 : i32 to index
    %c0_40 = arith.constant 0 : index
    %c0_41 = arith.constant 0 : index
    %128 = vector.load %arg5[%127, %c0_40, %c0_41] : memref<8x2x32xf32, #tpu.memory_space<vmem>>, vector<1x2x32xf32>
    %129 = vector.shape_cast %128 : vector<1x2x32xf32> to vector<2x32xf32>
    %130 = vector.shape_cast %126 : vector<2x32xf32> to vector<1x2x32xf32>
    tpu.vector_store %arg5[%127, %c0_40, %c0_41], %130 {strides = array<i32>} : memref<8x2x32xf32, #tpu.memory_space<vmem>>, vector<1x2x32xf32>,
    %131 = arith.index_cast %c3_i32 : i32 to index
    %c0_42 = arith.constant 0 : index
    %c0_43 = arith.constant 0 : index
    %132 = vector.load %arg6[%131, %c0_42, %c0_43] : memref<8x2x32xf32, #tpu.memory_space<vmem>>, vector<1x2x32xf32>
    %133 = vector.shape_cast %132 : vector<1x2x32xf32> to vector<2x32xf32>
    %134 = vector.shape_cast %119 : vector<2x32xf32> to vector<1x2x32xf32>
    tpu.vector_store %arg6[%131, %c0_42, %c0_43], %134 {strides = array<i32>} : memref<8x2x32xf32, #tpu.memory_space<vmem>>, vector<1x2x32xf32>,
    %c4_i32 = arith.constant 4 : i32
    %cst_44 = arith.constant dense<0.000000e+00> : vector<2x96xf32>
    %135 = tpu.matmul %126, %3, %cst_44 {dimension_numbers = #tpu.dot_dimension_numbers<[1], [0], [0], [1], [0, 0, 1, 1], [], []>} : vector<2x32xf32>, vector<32x96xf32>, vector<2x96xf32> -> vector<2x96xf32>
    %136 = arith.index_cast %c4_i32 : i32 to index
    %c0_45 = arith.constant 0 : index
    %c0_46 = arith.constant 0 : index
    %137 = vector.load %arg4[%136, %c0_45, %c0_46] : memref<8x2x96xf32, #tpu.memory_space<vmem>>, vector<1x2x96xf32>
    %138 = vector.shape_cast %137 : vector<1x2x96xf32> to vector<2x96xf32>
    %139 = arith.addf %135, %138 : vector<2x96xf32>
    %140 = vector.extract_strided_slice %139 {offsets = [0, 0], sizes = [2, 32], strides = [1, 1]} : vector<2x96xf32> to vector<2x32xf32>
    %141 = vector.extract_strided_slice %139 {offsets = [0, 32], sizes = [2, 32], strides = [1, 1]} : vector<2x96xf32> to vector<2x32xf32>
    %142 = vector.extract_strided_slice %139 {offsets = [0, 64], sizes = [2, 32], strides = [1, 1]} : vector<2x96xf32> to vector<2x32xf32>
    %143 = arith.negf %140 : vector<2x32xf32>
    %144 = math.exp %143 : vector<2x32xf32>
    %cst_47 = arith.constant 1.000000e+00 : f32
    %145 = vector.broadcast %cst_47 : f32 to vector<2x32xf32>
    %146 = arith.addf %145, %144 : vector<2x32xf32>
    %147 = arith.divf %145, %146 : vector<2x32xf32>
    %148 = arith.mulf %147, %119 : vector<2x32xf32>
    %149 = math.tanh %142 : vector<2x32xf32>
    %150 = arith.mulf %4, %149 : vector<2x32xf32>
    %151 = arith.addf %148, %150 : vector<2x32xf32>
    %152 = arith.negf %141 : vector<2x32xf32>
    %153 = math.exp %152 : vector<2x32xf32>
    %cst_48 = arith.constant 1.000000e+00 : f32
    %154 = vector.broadcast %cst_48 : f32 to vector<2x32xf32>
    %155 = arith.addf %154, %153 : vector<2x32xf32>
    %156 = arith.divf %154, %155 : vector<2x32xf32>
    %157 = math.tanh %151 : vector<2x32xf32>
    %158 = arith.mulf %156, %157 : vector<2x32xf32>
    %159 = arith.index_cast %c4_i32 : i32 to index
    %c0_49 = arith.constant 0 : index
    %c0_50 = arith.constant 0 : index
    %160 = vector.load %arg5[%159, %c0_49, %c0_50] : memref<8x2x32xf32, #tpu.memory_space<vmem>>, vector<1x2x32xf32>
    %161 = vector.shape_cast %160 : vector<1x2x32xf32> to vector<2x32xf32>
    %162 = vector.shape_cast %158 : vector<2x32xf32> to vector<1x2x32xf32>
    tpu.vector_store %arg5[%159, %c0_49, %c0_50], %162 {strides = array<i32>} : memref<8x2x32xf32, #tpu.memory_space<vmem>>, vector<1x2x32xf32>,
    %163 = arith.index_cast %c4_i32 : i32 to index
    %c0_51 = arith.constant 0 : index
    %c0_52 = arith.constant 0 : index
    %164 = vector.load %arg6[%163, %c0_51, %c0_52] : memref<8x2x32xf32, #tpu.memory_space<vmem>>, vector<1x2x32xf32>
    %165 = vector.shape_cast %164 : vector<1x2x32xf32> to vector<2x32xf32>
    %166 = vector.shape_cast %151 : vector<2x32xf32> to vector<1x2x32xf32>
    tpu.vector_store %arg6[%163, %c0_51, %c0_52], %166 {strides = array<i32>} : memref<8x2x32xf32, #tpu.memory_space<vmem>>, vector<1x2x32xf32>,
    %c5_i32 = arith.constant 5 : i32
    %cst_53 = arith.constant dense<0.000000e+00> : vector<2x96xf32>
    %167 = tpu.matmul %158, %3, %cst_53 {dimension_numbers = #tpu.dot_dimension_numbers<[1], [0], [0], [1], [0, 0, 1, 1], [], []>} : vector<2x32xf32>, vector<32x96xf32>, vector<2x96xf32> -> vector<2x96xf32>
    %168 = arith.index_cast %c5_i32 : i32 to index
    %c0_54 = arith.constant 0 : index
    %c0_55 = arith.constant 0 : index
    %169 = vector.load %arg4[%168, %c0_54, %c0_55] : memref<8x2x96xf32, #tpu.memory_space<vmem>>, vector<1x2x96xf32>
    %170 = vector.shape_cast %169 : vector<1x2x96xf32> to vector<2x96xf32>
    %171 = arith.addf %167, %170 : vector<2x96xf32>
    %172 = vector.extract_strided_slice %171 {offsets = [0, 0], sizes = [2, 32], strides = [1, 1]} : vector<2x96xf32> to vector<2x32xf32>
    %173 = vector.extract_strided_slice %171 {offsets = [0, 32], sizes = [2, 32], strides = [1, 1]} : vector<2x96xf32> to vector<2x32xf32>
    %174 = vector.extract_strided_slice %171 {offsets = [0, 64], sizes = [2, 32], strides = [1, 1]} : vector<2x96xf32> to vector<2x32xf32>
    %175 = arith.negf %172 : vector<2x32xf32>
    %176 = math.exp %175 : vector<2x32xf32>
    %cst_56 = arith.constant 1.000000e+00 : f32
    %177 = vector.broadcast %cst_56 : f32 to vector<2x32xf32>
    %178 = arith.addf %177, %176 : vector<2x32xf32>
    %179 = arith.divf %177, %178 : vector<2x32xf32>
    %180 = arith.mulf %179, %151 : vector<2x32xf32>
    %181 = math.tanh %174 : vector<2x32xf32>
    %182 = arith.mulf %4, %181 : vector<2x32xf32>
    %183 = arith.addf %180, %182 : vector<2x32xf32>
    %184 = arith.negf %173 : vector<2x32xf32>
    %185 = math.exp %184 : vector<2x32xf32>
    %cst_57 = arith.constant 1.000000e+00 : f32
    %186 = vector.broadcast %cst_57 : f32 to vector<2x32xf32>
    %187 = arith.addf %186, %185 : vector<2x32xf32>
    %188 = arith.divf %186, %187 : vector<2x32xf32>
    %189 = math.tanh %183 : vector<2x32xf32>
    %190 = arith.mulf %188, %189 : vector<2x32xf32>
    %191 = arith.index_cast %c5_i32 : i32 to index
    %c0_58 = arith.constant 0 : index
    %c0_59 = arith.constant 0 : index
    %192 = vector.load %arg5[%191, %c0_58, %c0_59] : memref<8x2x32xf32, #tpu.memory_space<vmem>>, vector<1x2x32xf32>
    %193 = vector.shape_cast %192 : vector<1x2x32xf32> to vector<2x32xf32>
    %194 = vector.shape_cast %190 : vector<2x32xf32> to vector<1x2x32xf32>
    tpu.vector_store %arg5[%191, %c0_58, %c0_59], %194 {strides = array<i32>} : memref<8x2x32xf32, #tpu.memory_space<vmem>>, vector<1x2x32xf32>,
    %195 = arith.index_cast %c5_i32 : i32 to index
    %c0_60 = arith.constant 0 : index
    %c0_61 = arith.constant 0 : index
    %196 = vector.load %arg6[%195, %c0_60, %c0_61] : memref<8x2x32xf32, #tpu.memory_space<vmem>>, vector<1x2x32xf32>
    %197 = vector.shape_cast %196 : vector<1x2x32xf32> to vector<2x32xf32>
    %198 = vector.shape_cast %183 : vector<2x32xf32> to vector<1x2x32xf32>
    tpu.vector_store %arg6[%195, %c0_60, %c0_61], %198 {strides = array<i32>} : memref<8x2x32xf32, #tpu.memory_space<vmem>>, vector<1x2x32xf32>,
    %c6_i32 = arith.constant 6 : i32
    %cst_62 = arith.constant dense<0.000000e+00> : vector<2x96xf32>
    %199 = tpu.matmul %190, %3, %cst_62 {dimension_numbers = #tpu.dot_dimension_numbers<[1], [0], [0], [1], [0, 0, 1, 1], [], []>} : vector<2x32xf32>, vector<32x96xf32>, vector<2x96xf32> -> vector<2x96xf32>
    %200 = arith.index_cast %c6_i32 : i32 to index
    %c0_63 = arith.constant 0 : index
    %c0_64 = arith.constant 0 : index
    %201 = vector.load %arg4[%200, %c0_63, %c0_64] : memref<8x2x96xf32, #tpu.memory_space<vmem>>, vector<1x2x96xf32>
    %202 = vector.shape_cast %201 : vector<1x2x96xf32> to vector<2x96xf32>
    %203 = arith.addf %199, %202 : vector<2x96xf32>
    %204 = vector.extract_strided_slice %203 {offsets = [0, 0], sizes = [2, 32], strides = [1, 1]} : vector<2x96xf32> to vector<2x32xf32>
    %205 = vector.extract_strided_slice %203 {offsets = [0, 32], sizes = [2, 32], strides = [1, 1]} : vector<2x96xf32> to vector<2x32xf32>
    %206 = vector.extract_strided_slice %203 {offsets = [0, 64], sizes = [2, 32], strides = [1, 1]} : vector<2x96xf32> to vector<2x32xf32>
    %207 = arith.negf %204 : vector<2x32xf32>
    %208 = math.exp %207 : vector<2x32xf32>
    %cst_65 = arith.constant 1.000000e+00 : f32
    %209 = vector.broadcast %cst_65 : f32 to vector<2x32xf32>
    %210 = arith.addf %209, %208 : vector<2x32xf32>
    %211 = arith.divf %209, %210 : vector<2x32xf32>
    %212 = arith.mulf %211, %183 : vector<2x32xf32>
    %213 = math.tanh %206 : vector<2x32xf32>
    %214 = arith.mulf %4, %213 : vector<2x32xf32>
    %215 = arith.addf %212, %214 : vector<2x32xf32>
    %216 = arith.negf %205 : vector<2x32xf32>
    %217 = math.exp %216 : vector<2x32xf32>
    %cst_66 = arith.constant 1.000000e+00 : f32
    %218 = vector.broadcast %cst_66 : f32 to vector<2x32xf32>
    %219 = arith.addf %218, %217 : vector<2x32xf32>
    %220 = arith.divf %218, %219 : vector<2x32xf32>
    %221 = math.tanh %215 : vector<2x32xf32>
    %222 = arith.mulf %220, %221 : vector<2x32xf32>
    %223 = arith.index_cast %c6_i32 : i32 to index
    %c0_67 = arith.constant 0 : index
    %c0_68 = arith.constant 0 : index
    %224 = vector.load %arg5[%223, %c0_67, %c0_68] : memref<8x2x32xf32, #tpu.memory_space<vmem>>, vector<1x2x32xf32>
    %225 = vector.shape_cast %224 : vector<1x2x32xf32> to vector<2x32xf32>
    %226 = vector.shape_cast %222 : vector<2x32xf32> to vector<1x2x32xf32>
    tpu.vector_store %arg5[%223, %c0_67, %c0_68], %226 {strides = array<i32>} : memref<8x2x32xf32, #tpu.memory_space<vmem>>, vector<1x2x32xf32>,
    %227 = arith.index_cast %c6_i32 : i32 to index
    %c0_69 = arith.constant 0 : index
    %c0_70 = arith.constant 0 : index
    %228 = vector.load %arg6[%227, %c0_69, %c0_70] : memref<8x2x32xf32, #tpu.memory_space<vmem>>, vector<1x2x32xf32>
    %229 = vector.shape_cast %228 : vector<1x2x32xf32> to vector<2x32xf32>
    %230 = vector.shape_cast %215 : vector<2x32xf32> to vector<1x2x32xf32>
    tpu.vector_store %arg6[%227, %c0_69, %c0_70], %230 {strides = array<i32>} : memref<8x2x32xf32, #tpu.memory_space<vmem>>, vector<1x2x32xf32>,
    %c7_i32 = arith.constant 7 : i32
    %cst_71 = arith.constant dense<0.000000e+00> : vector<2x96xf32>
    %231 = tpu.matmul %222, %3, %cst_71 {dimension_numbers = #tpu.dot_dimension_numbers<[1], [0], [0], [1], [0, 0, 1, 1], [], []>} : vector<2x32xf32>, vector<32x96xf32>, vector<2x96xf32> -> vector<2x96xf32>
    %232 = arith.index_cast %c7_i32 : i32 to index
    %c0_72 = arith.constant 0 : index
    %c0_73 = arith.constant 0 : index
    %233 = vector.load %arg4[%232, %c0_72, %c0_73] : memref<8x2x96xf32, #tpu.memory_space<vmem>>, vector<1x2x96xf32>
    %234 = vector.shape_cast %233 : vector<1x2x96xf32> to vector<2x96xf32>
    %235 = arith.addf %231, %234 : vector<2x96xf32>
    %236 = vector.extract_strided_slice %235 {offsets = [0, 0], sizes = [2, 32], strides = [1, 1]} : vector<2x96xf32> to vector<2x32xf32>
    %237 = vector.extract_strided_slice %235 {offsets = [0, 32], sizes = [2, 32], strides = [1, 1]} : vector<2x96xf32> to vector<2x32xf32>
    %238 = vector.extract_strided_slice %235 {offsets = [0, 64], sizes = [2, 32], strides = [1, 1]} : vector<2x96xf32> to vector<2x32xf32>
    %239 = arith.negf %236 : vector<2x32xf32>
    %240 = math.exp %239 : vector<2x32xf32>
    %cst_74 = arith.constant 1.000000e+00 : f32
    %241 = vector.broadcast %cst_74 : f32 to vector<2x32xf32>
    %242 = arith.addf %241, %240 : vector<2x32xf32>
    %243 = arith.divf %241, %242 : vector<2x32xf32>
    %244 = arith.mulf %243, %215 : vector<2x32xf32>
    %245 = math.tanh %238 : vector<2x32xf32>
    %246 = arith.mulf %4, %245 : vector<2x32xf32>
    %247 = arith.addf %244, %246 : vector<2x32xf32>
    %248 = arith.negf %237 : vector<2x32xf32>
    %249 = math.exp %248 : vector<2x32xf32>
    %cst_75 = arith.constant 1.000000e+00 : f32
    %250 = vector.broadcast %cst_75 : f32 to vector<2x32xf32>
    %251 = arith.addf %250, %249 : vector<2x32xf32>
    %252 = arith.divf %250, %251 : vector<2x32xf32>
    %253 = math.tanh %247 : vector<2x32xf32>
    %254 = arith.mulf %252, %253 : vector<2x32xf32>
    %255 = arith.index_cast %c7_i32 : i32 to index
    %c0_76 = arith.constant 0 : index
    %c0_77 = arith.constant 0 : index
    %256 = vector.load %arg5[%255, %c0_76, %c0_77] : memref<8x2x32xf32, #tpu.memory_space<vmem>>, vector<1x2x32xf32>
    %257 = vector.shape_cast %256 : vector<1x2x32xf32> to vector<2x32xf32>
    %258 = vector.shape_cast %254 : vector<2x32xf32> to vector<1x2x32xf32>
    tpu.vector_store %arg5[%255, %c0_76, %c0_77], %258 {strides = array<i32>} : memref<8x2x32xf32, #tpu.memory_space<vmem>>, vector<1x2x32xf32>,
    %259 = arith.index_cast %c7_i32 : i32 to index
    %c0_78 = arith.constant 0 : index
    %c0_79 = arith.constant 0 : index
    %260 = vector.load %arg6[%259, %c0_78, %c0_79] : memref<8x2x32xf32, #tpu.memory_space<vmem>>, vector<1x2x32xf32>
    %261 = vector.shape_cast %260 : vector<1x2x32xf32> to vector<2x32xf32>
    %262 = vector.shape_cast %247 : vector<2x32xf32> to vector<1x2x32xf32>
    tpu.vector_store %arg6[%259, %c0_78, %c0_79], %262 {strides = array<i32>} : memref<8x2x32xf32, #tpu.memory_space<vmem>>, vector<1x2x32xf32>,
    %c8_i32 = arith.constant 8 : i32
    %c0_80 = arith.constant 0 : index
    %c0_81 = arith.constant 0 : index
    %263 = vector.load %arg7[%c0_80, %c0_81] : memref<2x32xf32, #tpu.memory_space<vmem>>, vector<2x32xf32>
    tpu.vector_store %arg7[%c0_80, %c0_81], %254 {strides = array<i32>} : memref<2x32xf32, #tpu.memory_space<vmem>>, vector<2x32xf32>,
    %c0_82 = arith.constant 0 : index
    %c0_83 = arith.constant 0 : index
    %264 = vector.load %arg8[%c0_82, %c0_83] : memref<2x32xf32, #tpu.memory_space<vmem>>, vector<2x32xf32>
    tpu.vector_store %arg8[%c0_82, %c0_83], %247 {strides = array<i32>} : memref<2x32xf32, #tpu.memory_space<vmem>>, vector<2x32xf32>,
    return
  }
  func.func @transform_0(%arg0: i32, %arg1: i32) -> (i32, i32) {
    %c0_i32 = arith.constant 0 : i32
    %c0_i32_0 = arith.constant 0 : i32
    return %arg0, %c0_i32 : i32, i32
  }
  func.func @transform_1(%arg0: i32, %arg1: i32) -> (i32, i32) {
    %c0_i32 = arith.constant 0 : i32
    %c0_i32_0 = arith.constant 0 : i32
    %c0_i32_1 = arith.constant 0 : i32
    return %c0_i32, %c0_i32_0 : i32, i32
  }
  func.func @transform_2(%arg0: i32, %arg1: i32) -> (i32, i32, i32) {
    %c0_i32 = arith.constant 0 : i32
    %c0_i32_0 = arith.constant 0 : i32
    return %arg1, %arg0, %c0_i32 : i32, i32, i32
  }
  func.func @transform_3(%arg0: i32, %arg1: i32) -> (i32, i32, i32) {
    %c0_i32 = arith.constant 0 : i32
    %c0_i32_0 = arith.constant 0 : i32
    return %arg1, %arg0, %c0_i32 : i32, i32, i32
  }
  func.func @transform_4(%arg0: i32, %arg1: i32) -> (i32, i32, i32) {
    %c0_i32 = arith.constant 0 : i32
    %c0_i32_0 = arith.constant 0 : i32
    return %arg1, %arg0, %c0_i32 : i32, i32, i32
  }
}

</mosaic_0001>

<bundles_post_ra>
// kernel: ealstm_forward.1
= control target key start
LH: loop header
LB: loop body
LE: loop exit
PB: predicated region body
PF: predicated region fallthrough
CT: control target
= control target key end

     0   :  { %vm20_vm0 = vcmask 254976   ;;  %v1139_v0 = vmov 0.0|0.0   ;;  %vm1140_vm1 = vmmov 0   ;;  %v1141_v4 = vmov 0.0   ;;  %s1142_s24 = smov 64   ;;  %s1143_s29 = smov 32   ;;  %s1373_s1 = inlined_call_operand.vmem [shape: f32[32,96], index: 1, kind: input, shape index: {}]   ;;  %s1374_s2 = inlined_call_operand.vmem [shape: f32[8,2,96], index: 2, kind: input, shape index: {}]   ;;  %s1375_s0 = inlined_call_operand.vmem [shape: f32[2,32], index: 0, kind: input, shape index: {}]   ;;  %s1376_s4 = inlined_call_operand.vmem [shape: f32[8,2,32], index: 4, kind: output, shape index: {1}]   ;;  %s1377_s3 = inlined_call_operand.vmem [shape: f32[8,2,32], index: 3, kind: output, shape index: {0}]  }
   0x1   :  { %1021 = vmatprep.subr.bf16.mxu0 %v1139_v0  ;;  %v23_v1 = vld [vmem:[%s1373_s1] sm:$0xff]  ;;  %v24_v2 = vld [vmem:[%s1373_s1 + $0x8] sm:$0xff]  ;;  %v25_v3 = vld [vmem:[%s1373_s1 + $0x10] sm:$0xff]  ;;  %941 = vmatprep.mubr.msk.f32.mxu0 %vm1140_vm1, %v1141_v4  ;;  %21 = vst.msk [vmem:[#allocation2] sm:$0x3] %vm20_vm0, %v1141_v4  ;;  %vm31_vm2 = vcmask 261120  }
   0x2   :  { %22 = vst.msk [vmem:[#allocation3] sm:$0x3] %vm20_vm0, %v1141_v4  ;;  %v1186_v5 = vpack.c.bf16 %v24_v2, %v23_v1  ;;  %v26_v6 = vld [vmem:[%s1373_s1 + $0x18] sm:$0xff]  ;;  %1027 = vmatprep.subr.bf16.mxu1 %v1139_v0  ;;  %952 = vmatprep.mubr.msk.f32.mxu1 %vm1140_vm1, %v1141_v4  ;;  %v30_v9 = vld [vmem:[%s1374_s2] sm:$0x3]  ;;  %s1144_s30 = smov 96  }
   0x3   :  { %v1195_v7 = vpack.c.bf16 %v26_v6, %v25_v3  ;;  %v1218_v19 = vld [vmem:[%s1375_s0] sm:$0x3]  ;;  %v858_v28 = vld [vmem:[%s1374_s2 + $0x2] sm:$0x3]  ;;  %v863_v45 = vld [vmem:[%s1374_s2 + $0x4] sm:$0x3] }
   0x4   :  { %1023 = vmatpush3.bf16.msra.mxu0 %v1186_v5  ;;  %1029 = vmatpush3.bf16.msra.mxu1 %v1186_v5  ;;  %v868_v62 = vld [vmem:[%s1374_s2 + $0x6] sm:$0x3] }
   0x5   :  { %1024 = vmatprep.subr.bf16.mxu0 %v1139_v0  ;;  %1030 = vmatprep.subr.bf16.mxu1 %v1139_v0 }
   0x8   :  { %1026 = vmatpush3.bf16.msra.mxu0 %v1195_v7  ;;  %v28_v8 = vld [vmem:[#allocation2] sm:$0x3]  ;;  %1032 = vmatpush3.bf16.msra.mxu1 %v1195_v7 }
   0x9   :  { %1033 = vmatprep.subr.bf16.mxu0 %v1139_v0  ;;  %1039 = vmatprep.subr.bf16.mxu1 %v1139_v0  ;;  %v29_v18 = vld [vmem:[#allocation3] sm:$0x3] }
   0xb   :  { %942 = vmatmul.mubr.msk.f32.vlgmr.msra.gmra.mrb[0].mxu0 %vm31_vm2, %v28_v8 }
   0xc   :  { %1035 = vmatpush3.bf16.msra.mxu0 %v1186_v5  ;;  %963 = vmatprep.mubr.msk.f32.mxu0 %vm1140_vm1, %v1141_v4 }
   0xd   :  { %1036 = vmatprep.subr.bf16.mxu0 %v1139_v0 }
  0x10   :  { %1038 = vmatpush3.bf16.msra.mxu0 %v1195_v7 }
  0x11   :  { %1045 = vmatprep.subr.bf16.mxu0 %v1139_v0 }
  0xde   :  { %v101_v10 = vpop.f32.mrb[0].mxu0 }
  0xdf   :  { %v102_v11 = vadd.f32 %v101_v10, %v30_v9  ;;  %v943_v12 = vpop.f32.mrb[1].mxu0 }
  0xe1   :  { %1075 = vtanh.f32 %v102_v11  ;;  %v857_v14 = vmul.f32 -1.442695, %v102_v11 }
  0xe3   :  { %1077 = vpow2.f32 %v857_v14 }
  0xeb   :  { %v1076_v13 = vpop.eup %1075 }
  0xec   :  { %114 = vrot.lane.b32.xlu0 %v1076_v13, %s1142_s24 }
  0xed   :  { %v1078_v15 = vpop.eup %1077 }
  0xee   :  { %v108_v16 = vadd.f32 1.0, %v1078_v15 }
  0xf0   :  { %1079 = vrcp.f32 %v108_v16 }
  0xfa   :  { %v1080_v17 = vpop.eup %1079 }
  0xfb   :  { %v111_v21 = vmul.f32 %v1080_v17, %v29_v18 }
 0x15e   :  { %v115_v20 = vpop.permute.xlu0 %114 }
 0x15f   :  { %v117_v22 = vmul.f32 %v115_v20, %v1218_v19  ;;  %v873_v20 = vld [vmem:[%s1374_s2 + $0x8] sm:$0x3] }
 0x161   :  { %v118_v23 = vadd.f32 %v117_v22, %v111_v21 }
 0x163   :  { %1081 = vtanh.f32 %v118_v23  ;;  %131 = vst.msk [vmem:[%s1376_s4] sm:$0x3] %vm20_vm0, %v118_v23 }
 0x16d   :  { %v1082_v24 = vpop.eup %1081 }
 0x16e   :  { %121 = vrot.lane.b32.xlu0 %v1082_v24, %s1143_s29 }
 0x1e0   :  { %v122_v25 = vpop.permute.xlu0 %121 }
 0x1e1   :  { %v124_v26 = vmul.f32 %v1080_v17, %v122_v25 }
 0x1e3   :  { %126 = vrot.lane.b32.xlu1 %v124_v26, %s1144_s30 }
 0x255   :  { %v127_v27 = vpop.permute.xlu1 %126 }
 0x256   :  { %130 = vst.msk [vmem:[%s1377_s3] sm:$0x3] %vm20_vm0, %v127_v27  ;;  %953 = vmatmul.mubr.msk.f32.vlgmr.msra.gmra.mrb[0].mxu1 %vm31_vm2, %v127_v27 }
 0x257   :  { %1041 = vmatpush3.bf16.msra.mxu1 %v1186_v5  ;;  %974 = vmatprep.mubr.msk.f32.mxu1 %vm1140_vm1, %v1141_v4 }
 0x258   :  { %1042 = vmatprep.subr.bf16.mxu1 %v1139_v0 }
 0x25b   :  { %1044 = vmatpush3.bf16.msra.mxu1 %v1195_v7 }
 0x25c   :  { %1051 = vmatprep.subr.bf16.mxu1 %v1139_v0 }
 0x329   :  { %v202_v29 = vpop.f32.mrb[0].mxu1 }
 0x32a   :  { %v203_v30 = vadd.f32 %v858_v28, %v202_v29  ;;  %v954_v31 = vpop.f32.mrb[1].mxu1 }
 0x32c   :  { %1083 = vtanh.f32 %v203_v30  ;;  %v860_v33 = vmul.f32 -1.442695, %v203_v30 }
 0x32e   :  { %1085 = vpow2.f32 %v860_v33 }
 0x336   :  { %v1084_v32 = vpop.eup %1083 }
 0x337   :  { %215 = vrot.lane.b32.xlu1 %v1084_v32, %s1142_s24 }
 0x338   :  { %v1086_v34 = vpop.eup %1085 }
 0x339   :  { %v209_v35 = vadd.f32 1.0, %v1086_v34 }
 0x33b   :  { %1087 = vrcp.f32 %v209_v35 }
 0x345   :  { %v1088_v36 = vpop.eup %1087 }
 0x346   :  { %v212_v38 = vmul.f32 %v1088_v36, %v118_v23 }
 0x3a9   :  { %v216_v37 = vpop.permute.xlu1 %215 }
 0x3aa   :  { %v218_v39 = vmul.f32 %v216_v37, %v1218_v19  ;;  %v878_v37 = vld [vmem:[%s1374_s2 + $0xa] sm:$0x3] }
 0x3ac   :  { %v219_v40 = vadd.f32 %v218_v39, %v212_v38 }
 0x3ae   :  { %1089 = vtanh.f32 %v219_v40  ;;  %862 = vst.msk [vmem:[%s1376_s4 + $0x2] sm:$0x3] %vm20_vm0, %v219_v40 }
 0x3b8   :  { %v1090_v41 = vpop.eup %1089 }
 0x3b9   :  { %222 = vrot.lane.b32.xlu0 %v1090_v41, %s1143_s29 }
 0x42b   :  { %v223_v42 = vpop.permute.xlu0 %222 }
 0x42c   :  { %v225_v43 = vmul.f32 %v1088_v36, %v223_v42 }
 0x42e   :  { %227 = vrot.lane.b32.xlu1 %v225_v43, %s1144_s30 }
 0x4a0   :  { %v228_v44 = vpop.permute.xlu1 %227 }
 0x4a1   :  { %861 = vst.msk [vmem:[%s1377_s3 + $0x2] sm:$0x3] %vm20_vm0, %v228_v44  ;;  %964 = vmatmul.mubr.msk.f32.vlgmr.msra.gmra.mrb[2].mxu0 %vm31_vm2, %v228_v44 }
 0x4a2   :  { %1047 = vmatpush3.bf16.msra.mxu0 %v1186_v5  ;;  %985 = vmatprep.mubr.msk.f32.mxu0 %vm1140_vm1, %v1141_v4 }
 0x4a3   :  { %1048 = vmatprep.subr.bf16.mxu0 %v1139_v0 }
 0x4a6   :  { %1050 = vmatpush3.bf16.msra.mxu0 %v1195_v7 }
 0x4a7   :  { %1057 = vmatprep.subr.bf16.mxu0 %v1139_v0 }
 0x574   :  { %v304_v46 = vpop.f32.mrb[2].mxu0 }
 0x575   :  { %v305_v47 = vadd.f32 %v863_v45, %v304_v46  ;;  %v965_v48 = vpop.f32.mrb[3].mxu0 }
 0x577   :  { %1091 = vtanh.f32 %v305_v47  ;;  %v865_v50 = vmul.f32 -1.442695, %v305_v47 }
 0x579   :  { %1093 = vpow2.f32 %v865_v50  ;;  %v883_v50 = vld [vmem:[%s1374_s2 + $0xc] sm:$0x3] }
 0x581   :  { %v1092_v49 = vpop.eup %1091 }
 0x582   :  { %317 = vrot.lane.b32.xlu0 %v1092_v49, %s1142_s24 }
 0x583   :  { %v1094_v51 = vpop.eup %1093 }
 0x584   :  { %v311_v52 = vadd.f32 1.0, %v1094_v51 }
 0x586   :  { %1095 = vrcp.f32 %v311_v52 }
 0x590   :  { %v1096_v53 = vpop.eup %1095 }
 0x591   :  { %v314_v55 = vmul.f32 %v1096_v53, %v219_v40 }
 0x5f4   :  { %v318_v54 = vpop.permute.xlu0 %317 }
 0x5f5   :  { %v320_v56 = vmul.f32 %v318_v54, %v1218_v19 }
 0x5f7   :  { %v321_v57 = vadd.f32 %v320_v56, %v314_v55 }
 0x5f9   :  { %1097 = vtanh.f32 %v321_v57  ;;  %867 = vst.msk [vmem:[%s1376_s4 + $0x4] sm:$0x3] %vm20_vm0, %v321_v57 }
 0x603   :  { %v1098_v58 = vpop.eup %1097 }
 0x604   :  { %324 = vrot.lane.b32.xlu1 %v1098_v58, %s1143_s29 }
 0x676   :  { %v325_v59 = vpop.permute.xlu1 %324 }
 0x677   :  { %v327_v60 = vmul.f32 %v1096_v53, %v325_v59 }
 0x679   :  { %329 = vrot.lane.b32.xlu0 %v327_v60, %s1144_s30 }
 0x6eb   :  { %v330_v61 = vpop.permute.xlu0 %329 }
 0x6ec   :  { %866 = vst.msk [vmem:[%s1377_s3 + $0x4] sm:$0x3] %vm20_vm0, %v330_v61  ;;  %975 = vmatmul.mubr.msk.f32.vlgmr.msra.gmra.mrb[2].mxu1 %vm31_vm2, %v330_v61 }
 0x6ed   :  { %1053 = vmatpush3.bf16.msra.mxu1 %v1186_v5  ;;  %996 = vmatprep.mubr.msk.f32.mxu1 %vm1140_vm1, %v1141_v4 }
 0x6ee   :  { %1054 = vmatprep.subr.bf16.mxu1 %v1139_v0 }
 0x6f1   :  { %1056 = vmatpush3.bf16.msra.mxu1 %v1195_v7 }
 0x6f2   :  { %1063 = vmatprep.subr.bf16.mxu1 %v1139_v0 }
 0x7bf   :  { %v406_v63 = vpop.f32.mrb[2].mxu1 }
 0x7c0   :  { %v407_v1 = vadd.f32 %v868_v62, %v406_v63  ;;  %v976_v2 = vpop.f32.mrb[3].mxu1 }
 0x7c2   :  { %1099 = vtanh.f32 %v407_v1  ;;  %v870_v6 = vmul.f32 -1.442695, %v407_v1 }
 0x7c4   :  { %1101 = vpow2.f32 %v870_v6  ;;  %v888_v6 = vld [vmem:[%s1374_s2 + $0xe] sm:$0x3] }
 0x7cc   :  { %v1100_v3 = vpop.eup %1099 }
 0x7cd   :  { %419 = vrot.lane.b32.xlu1 %v1100_v3, %s1142_s24 }
 0x7ce   :  { %v1102_v8 = vpop.eup %1101 }
 0x7cf   :  { %v413_v9 = vadd.f32 1.0, %v1102_v8 }
 0x7d1   :  { %1103 = vrcp.f32 %v413_v9 }
 0x7db   :  { %v1104_v10 = vpop.eup %1103 }
 0x7dc   :  { %v416_v12 = vmul.f32 %v1104_v10, %v321_v57 }
 0x83f   :  { %v420_v11 = vpop.permute.xlu1 %419 }
 0x840   :  { %v422_v13 = vmul.f32 %v420_v11, %v1218_v19 }
 0x842   :  { %v423_v14 = vadd.f32 %v422_v13, %v416_v12 }
 0x844   :  { %1105 = vtanh.f32 %v423_v14  ;;  %872 = vst.msk [vmem:[%s1376_s4 + $0x6] sm:$0x3] %vm20_vm0, %v423_v14 }
 0x84e   :  { %v1106_v15 = vpop.eup %1105 }
 0x84f   :  { %426 = vrot.lane.b32.xlu0 %v1106_v15, %s1143_s29 }
 0x8c1   :  { %v427_v16 = vpop.permute.xlu0 %426 }
 0x8c2   :  { %v429_v17 = vmul.f32 %v1104_v10, %v427_v16 }
 0x8c4   :  { %431 = vrot.lane.b32.xlu1 %v429_v17, %s1144_s30 }
 0x936   :  { %v432_v18 = vpop.permute.xlu1 %431 }
 0x937   :  { %871 = vst.msk [vmem:[%s1377_s3 + $0x6] sm:$0x3] %vm20_vm0, %v432_v18  ;;  %986 = vmatmul.mubr.msk.f32.vlgmr.msra.gmra.mrb[4].mxu0 %vm31_vm2, %v432_v18 }
 0x938   :  { %1059 = vmatpush3.bf16.msra.mxu0 %v1186_v5  ;;  %1007 = vmatprep.mubr.msk.f32.mxu0 %vm1140_vm1, %v1141_v4 }
 0x939   :  { %1060 = vmatprep.subr.bf16.mxu0 %v1139_v0 }
 0x93c   :  { %1062 = vmatpush3.bf16.msra.mxu0 %v1195_v7 }
 0xa0a   :  { %v508_v21 = vpop.f32.mrb[4].mxu0 }
 0xa0b   :  { %v509_v22 = vadd.f32 %v873_v20, %v508_v21  ;;  %v987_v23 = vpop.f32.mrb[5].mxu0 }
 0xa0d   :  { %1107 = vtanh.f32 %v509_v22  ;;  %v875_v25 = vmul.f32 -1.442695, %v509_v22 }
 0xa0f   :  { %1109 = vpow2.f32 %v875_v25 }
 0xa17   :  { %v1108_v24 = vpop.eup %1107 }
 0xa18   :  { %521 = vrot.lane.b32.xlu0 %v1108_v24, %s1142_s24 }
 0xa19   :  { %v1110_v26 = vpop.eup %1109 }
 0xa1a   :  { %v515_v27 = vadd.f32 1.0, %v1110_v26 }
 0xa1c   :  { %1111 = vrcp.f32 %v515_v27 }
 0xa26   :  { %v1112_v28 = vpop.eup %1111 }
 0xa27   :  { %v518_v30 = vmul.f32 %v1112_v28, %v423_v14 }
 0xa8a   :  { %v522_v29 = vpop.permute.xlu0 %521 }
 0xa8b   :  { %v524_v31 = vmul.f32 %v522_v29, %v1218_v19 }
 0xa8d   :  { %v525_v32 = vadd.f32 %v524_v31, %v518_v30 }
 0xa8f   :  { %1113 = vtanh.f32 %v525_v32  ;;  %877 = vst.msk [vmem:[%s1376_s4 + $0x8] sm:$0x3] %vm20_vm0, %v525_v32 }
 0xa99   :  { %v1114_v33 = vpop.eup %1113 }
 0xa9a   :  { %528 = vrot.lane.b32.xlu1 %v1114_v33, %s1143_s29 }
 0xb0c   :  { %v529_v34 = vpop.permute.xlu1 %528 }
 0xb0d   :  { %v531_v35 = vmul.f32 %v1112_v28, %v529_v34 }
 0xb0f   :  { %533 = vrot.lane.b32.xlu0 %v531_v35, %s1144_s30 }
 0xb81   :  { %v534_v36 = vpop.permute.xlu0 %533 }
 0xb82   :  { %876 = vst.msk [vmem:[%s1377_s3 + $0x8] sm:$0x3] %vm20_vm0, %v534_v36  ;;  %997 = vmatmul.mubr.msk.f32.vlgmr.msra.gmra.mrb[4].mxu1 %vm31_vm2, %v534_v36 }
 0xb83   :  { %1065 = vmatpush3.bf16.msra.mxu1 %v1186_v5  ;;  %1018 = vmatprep.mubr.msk.f32.mxu1 %vm1140_vm1, %v1141_v4 }
 0xb84   :  { %1066 = vmatprep.subr.bf16.mxu1 %v1139_v0 }
 0xb87   :  { %1068 = vmatpush3.bf16.msra.mxu1 %v1195_v7 }
 0xc55   :  { %v610_v38 = vpop.f32.mrb[4].mxu1 }
 0xc56   :  { %v611_v39 = vadd.f32 %v878_v37, %v610_v38  ;;  %v998_v40 = vpop.f32.mrb[5].mxu1 }
 0xc58   :  { %1115 = vtanh.f32 %v611_v39  ;;  %v880_v42 = vmul.f32 -1.442695, %v611_v39 }
 0xc5a   :  { %1117 = vpow2.f32 %v880_v42 }
 0xc62   :  { %v1116_v41 = vpop.eup %1115 }
 0xc63   :  { %623 = vrot.lane.b32.xlu1 %v1116_v41, %s1142_s24 }
 0xc64   :  { %v1118_v5 = vpop.eup %1117 }
 0xc65   :  { %v617_v43 = vadd.f32 1.0, %v1118_v5 }
 0xc67   :  { %1119 = vrcp.f32 %v617_v43 }
 0xc71   :  { %v1120_v4 = vpop.eup %1119 }
 0xc72   :  { %v620_v44 = vmul.f32 %v1120_v4, %v525_v32 }
 0xcd5   :  { %v624_v0 = vpop.permute.xlu1 %623 }
 0xcd6   :  { %v626_v7 = vmul.f32 %v624_v0, %v1218_v19 }
 0xcd8   :  { %v627_v45 = vadd.f32 %v626_v7, %v620_v44 }
 0xcda   :  { %1121 = vtanh.f32 %v627_v45  ;;  %882 = vst.msk [vmem:[%s1376_s4 + $0xa] sm:$0x3] %vm20_vm0, %v627_v45 }
 0xce4   :  { %v1122_v46 = vpop.eup %1121 }
 0xce5   :  { %630 = vrot.lane.b32.xlu0 %v1122_v46, %s1143_s29 }
 0xd57   :  { %v631_v47 = vpop.permute.xlu0 %630 }
 0xd58   :  { %v633_v48 = vmul.f32 %v1120_v4, %v631_v47 }
 0xd5a   :  { %635 = vrot.lane.b32.xlu1 %v633_v48, %s1144_s30 }
 0xdcc   :  { %v636_v49 = vpop.permute.xlu1 %635 }
 0xdcd   :  { %881 = vst.msk [vmem:[%s1377_s3 + $0xa] sm:$0x3] %vm20_vm0, %v636_v49  ;;  %1008 = vmatmul.mubr.msk.f32.vlgmr.msra.gmra.mrb[6].mxu0 %vm31_vm2, %v636_v49 }
 0xea0   :  { %v712_v51 = vpop.f32.mrb[6].mxu0 }
 0xea1   :  { %v713_v52 = vadd.f32 %v883_v50, %v712_v51  ;;  %v1009_v53 = vpop.f32.mrb[7].mxu0 }
 0xea3   :  { %1123 = vtanh.f32 %v713_v52  ;;  %v885_v55 = vmul.f32 -1.442695, %v713_v52 }
 0xea5   :  { %1125 = vpow2.f32 %v885_v55 }
 0xead   :  { %v1124_v54 = vpop.eup %1123 }
 0xeae   :  { %725 = vrot.lane.b32.xlu0 %v1124_v54, %s1142_s24 }
 0xeaf   :  { %v1126_v56 = vpop.eup %1125 }
 0xeb0   :  { %v719_v57 = vadd.f32 1.0, %v1126_v56 }
 0xeb2   :  { %1127 = vrcp.f32 %v719_v57 }
 0xebc   :  { %v1128_v58 = vpop.eup %1127 }
 0xebd   :  { %v722_v60 = vmul.f32 %v1128_v58, %v627_v45 }
 0xf20   :  { %v726_v59 = vpop.permute.xlu0 %725 }
 0xf21   :  { %v728_v61 = vmul.f32 %v726_v59, %v1218_v19 }
 0xf23   :  { %v729_v62 = vadd.f32 %v728_v61, %v722_v60 }
 0xf25   :  { %1129 = vtanh.f32 %v729_v62  ;;  %887 = vst.msk [vmem:[%s1376_s4 + $0xc] sm:$0x3] %vm20_vm0, %v729_v62 }
 0xf2f   :  { %v1130_v63 = vpop.eup %1129 }
 0xf30   :  { %732 = vrot.lane.b32.xlu1 %v1130_v63, %s1143_s29 }
 0xfa2   :  { %v733_v1 = vpop.permute.xlu1 %732 }
 0xfa3   :  { %v735_v2 = vmul.f32 %v1128_v58, %v733_v1 }
 0xfa5   :  { %737 = vrot.lane.b32.xlu0 %v735_v2, %s1144_s30 }
0x1017   :  { %v738_v3 = vpop.permute.xlu0 %737 }
0x1018   :  { %886 = vst.msk [vmem:[%s1377_s3 + $0xc] sm:$0x3] %vm20_vm0, %v738_v3  ;;  %1019 = vmatmul.mubr.msk.f32.vlgmr.msra.gmra.mrb[6].mxu1 %vm31_vm2, %v738_v3 }
0x10eb   :  { %v814_v8 = vpop.f32.mrb[6].mxu1 }
0x10ec   :  { %v815_v9 = vadd.f32 %v888_v6, %v814_v8  ;;  %v1020_v10 = vpop.f32.mrb[7].mxu1 }
0x10ee   :  { %1131 = vtanh.f32 %v815_v9  ;;  %v890_v12 = vmul.f32 -1.442695, %v815_v9 }
0x10f0   :  { %1133 = vpow2.f32 %v890_v12 }
0x10f8   :  { %v1132_v11 = vpop.eup %1131 }
0x10f9   :  { %827 = vrot.lane.b32.xlu1 %v1132_v11, %s1142_s24 }
0x10fa   :  { %v1134_v13 = vpop.eup %1133 }
0x10fb   :  { %v821_v14 = vadd.f32 1.0, %v1134_v13 }
0x10fd   :  { %1135 = vrcp.f32 %v821_v14 }
0x1107   :  { %v1136_v15 = vpop.eup %1135 }
0x1108   :  { %v824_v17 = vmul.f32 %v1136_v15, %v729_v62 }
0x116b   :  { %v828_v16 = vpop.permute.xlu1 %827 }
0x116c   :  { %v830_v18 = vmul.f32 %v828_v16, %v1218_v19 }
0x116e   :  { %v831_v20 = vadd.f32 %v830_v18, %v824_v17 }
0x1170   :  { %1137 = vtanh.f32 %v831_v20  ;;  %892 = vst.msk [vmem:[%s1376_s4 + $0xe] sm:$0x3] %vm20_vm0, %v831_v20  ;;  %847 = vst.msk [vmem:[#allocation3] sm:$0x3] %vm20_vm0, %v831_v20 }
0x117a   :  { %v1138_v21 = vpop.eup %1137 }
0x117b   :  { %834 = vrot.lane.b32.xlu0 %v1138_v21, %s1143_s29 }
0x11ed   :  { %v835_v22 = vpop.permute.xlu0 %834 }
0x11ee   :  { %v837_v23 = vmul.f32 %v1136_v15, %v835_v22 }
0x11f0   :  { %839 = vrot.lane.b32.xlu1 %v837_v23, %s1144_s30 }
0x1262   :  { %v840_v24 = vpop.permute.xlu1 %839 }
0x1263   :  { %891 = vst.msk [vmem:[%s1377_s3 + $0xe] sm:$0x3] %vm20_vm0, %v840_v24  ;;  %846 = vst.msk [vmem:[#allocation2] sm:$0x3] %vm20_vm0, %v840_v24 }

</bundles_post_ra>
